<compile_context>
chip_gen: v5e
topology: v5e:2x2
jax: 0.10.0
libtpu: 0.0.40
codegen_flags: <defaults>
</compile_context>

<pallas_src>
import jax
import jax.numpy as jnp
from jax.experimental import pallas as pl
from jax.experimental.pallas import tpu as pltpu

IN_DIM = 48 * 4 * 4   # 768
HID = 100
OUT = 10
HID_P = 128           # lane-padded hidden width
OUT_P = 128           # lane-padded output width
BN_EPS = 1e-5


def _round_up(n, m):
    return ((n + m - 1) // m) * m


def predictor_kernel(x_ref, w1_ref, w2_ref, w3_ref, b_ref, out_ref):
    # x_ref:  (TB, 768)   bf16 batch tile
    # w1_ref: (768, 128)  bf16 (BN1 folded, columns 100..127 zero)
    # w2_ref: (128, 128)  bf16 (BN2 folded, pad rows/cols zero)
    # w3_ref: (128, 128)  bf16 (cols 10..127 zero)
    # b_ref:  (8, 128)    f32 bias slab: row0=b1', row1=b2', row2=b3, rest 0
    b = b_ref[...]
    x = x_ref[...]

    # fc1 (+ folded BN1) + ReLU
    h = jnp.dot(x, w1_ref[...], preferred_element_type=jnp.float32) + b[0:1, :]
    h = jnp.maximum(h, 0.0)

    # fc2 (+ folded BN2) + ReLU
    h = jnp.dot(h.astype(jnp.bfloat16), w2_ref[...],
                preferred_element_type=jnp.float32) + b[1:2, :]
    h = jnp.maximum(h, 0.0)

    # fc3 (logits; padded lanes stay exactly zero)
    out = jnp.dot(h.astype(jnp.bfloat16), w3_ref[...],
                  preferred_element_type=jnp.float32) + b[2:3, :]
    out_ref[...] = out.astype(out_ref.dtype)


def fold_and_pad_params(params):
    """Fold eval-mode BN into the Linear layers, pad to lane-dense widths,
    cast weights to bf16, pack biases into one slab."""
    s1 = params["g1"] * jax.lax.rsqrt(params["v1"] + BN_EPS)     # (1, HID)
    w1f = params["w1"] * s1                                      # (768, HID)
    b1f = params["b1"] * s1 + params["beta1"] - params["m1"] * s1

    s2 = params["g2"] * jax.lax.rsqrt(params["v2"] + BN_EPS)
    w2f = params["w2"] * s2
    b2f = params["b2"] * s2 + params["beta2"] - params["m2"] * s2

    w1p = jnp.zeros((IN_DIM, HID_P), jnp.bfloat16).at[:, :HID].set(
        w1f.astype(jnp.bfloat16))
    w2p = jnp.zeros((HID_P, HID_P), jnp.bfloat16).at[:HID, :HID].set(
        w2f.astype(jnp.bfloat16))
    w3p = jnp.zeros((HID_P, OUT_P), jnp.bfloat16).at[:HID, :OUT].set(
        params["w3"].astype(jnp.bfloat16))

    bias = jnp.zeros((8, OUT_P), jnp.float32)
    bias = bias.at[0, :HID].set(b1f[0])
    bias = bias.at[1, :HID].set(b2f[0])
    bias = bias.at[2, :OUT].set(params["b3"][0])

    return {"w1": w1p, "w2": w2p, "w3": w3p, "bias": bias}


def predictor_forward(x, folded, *, tb=512):
    """x: (B, 768) f32. folded: output of fold_and_pad_params."""
    B = x.shape[0]
    TB = min(tb, _round_up(B, 8))          # sublane-aligned batch tile
    Bp = _round_up(B, TB)
    if Bp != B:
        x = jnp.pad(x, ((0, Bp - B), (0, 0)))
    x_bf = x.astype(jnp.bfloat16)

    grid = (Bp // TB,)
    out = pl.pallas_call(
        predictor_kernel,
        out_shape=jax.ShapeDtypeStruct((Bp, OUT_P), jnp.float32),
        grid=grid,
        in_specs=[
            pl.BlockSpec((TB, IN_DIM), lambda i: (i, 0)),      # batch tile
            pl.BlockSpec((IN_DIM, HID_P), lambda i: (0, 0)),   # VMEM-resident
            pl.BlockSpec((HID_P, HID_P), lambda i: (0, 0)),    # VMEM-resident
            pl.BlockSpec((HID_P, OUT_P), lambda i: (0, 0)),    # VMEM-resident
            pl.BlockSpec((8, OUT_P), lambda i: (0, 0)),        # bias slab
        ],
        out_specs=pl.BlockSpec((TB, OUT_P), lambda i: (i, 0)),
        compiler_params=pltpu.CompilerParams(
            dimension_semantics=("parallel",)),
    )(x_bf, folded["w1"], folded["w2"], folded["w3"], folded["bias"])
    return out[:B, :OUT]


def init_params(key):
    """Deterministic synthetic parameters with the module's shapes
    (Linear weights stored pre-transposed as (in, out); BN params (1, F))."""
    ks = jax.random.split(key, 9)
    s1 = 1.0 / jnp.sqrt(IN_DIM)
    s2 = 1.0 / jnp.sqrt(HID)
    params = {
        "w1": jax.random.uniform(ks[0], (IN_DIM, HID), jnp.float32, -s1, s1),
        "b1": jax.random.uniform(ks[1], (1, HID), jnp.float32, -s1, s1),
        "w2": jax.random.uniform(ks[2], (HID, HID), jnp.float32, -s2, s2),
        "b2": jax.random.uniform(ks[3], (1, HID), jnp.float32, -s2, s2),
        "w3": jax.random.uniform(ks[4], (HID, OUT), jnp.float32, -s2, s2),
        "b3": jax.random.uniform(ks[5], (1, OUT), jnp.float32, -s2, s2),
        # BatchNorm1d(100) #1 — nontrivial deterministic running stats
        "g1": 1.0 + 0.1 * jax.random.normal(ks[6], (1, HID), jnp.float32),
        "beta1": 0.05 * jnp.ones((1, HID), jnp.float32),
        "m1": 0.1 * jax.random.normal(ks[7], (1, HID), jnp.float32),
        "v1": 1.0 + 0.2 * jnp.abs(jax.random.normal(ks[8], (1, HID), jnp.float32)),
        # BatchNorm1d(100) #2
        "g2": jnp.linspace(0.9, 1.1, HID, dtype=jnp.float32).reshape(1, HID),
        "beta2": -0.02 * jnp.ones((1, HID), jnp.float32),
        "m2": jnp.linspace(-0.1, 0.1, HID, dtype=jnp.float32).reshape(1, HID),
        "v2": jnp.linspace(0.8, 1.2, HID, dtype=jnp.float32).reshape(1, HID),
    }
    return params


def reference_forward(x, p):
    """Pure-JAX f32 reference matching the PyTorch eval-mode forward."""
    h = x @ p["w1"] + p["b1"]
    h = (h - p["m1"]) / jnp.sqrt(p["v1"] + BN_EPS) * p["g1"] + p["beta1"]
    h = jnp.maximum(h, 0.0)
    h = h @ p["w2"] + p["b2"]
    h = (h - p["m2"]) / jnp.sqrt(p["v2"] + BN_EPS) * p["g2"] + p["beta2"]
    h = jnp.maximum(h, 0.0)
    return h @ p["w3"] + p["b3"]


if __name__ == "__main__":
    key = jax.random.PRNGKey(0)
    k_x, k_p = jax.random.split(key)

    B = 8  # small batch; input to Predictor is a flattened feature map
    x = jax.random.normal(k_x, (B, IN_DIM), jnp.float32)
    params = init_params(k_p)
    folded = fold_and_pad_params(params)

    out = predictor_forward(x, folded)
    out = jax.block_until_ready(out)

    ref = reference_forward(x, params)
    assert out.shape == (B, OUT)
    # Tolerance reflects bf16 weight/activation quantization (f32 accumulation).
    assert jnp.allclose(out, ref, atol=5e-2, rtol=5e-2), (
        "mismatch vs reference: max abs diff = "
        + str(float(jnp.max(jnp.abs(out - ref)))))

    # TODO(synk): dropout (training=True) and grad_reverse are training-only /
    # backward-only and are intentionally not part of this inference kernel.
    print("KERNEL_OK")
</pallas_src>

<mosaic_0001>
module attributes {stable_mosaic.version = 11 : i64} {
  func.func @predictor_kernel(%arg0: i32, %arg1: memref<8x768xbf16, #tpu.memory_space<vmem>>, %arg2: memref<768x128xbf16, #tpu.memory_space<vmem>>, %arg3: memref<128x128xbf16, #tpu.memory_space<vmem>>, %arg4: memref<128x128xbf16, #tpu.memory_space<vmem>>, %arg5: memref<8x128xf32, #tpu.memory_space<vmem>>, %arg6: memref<8x128xf32, #tpu.memory_space<vmem>>) attributes {dimension_semantics = [#tpu.dimension_semantics<parallel>], iteration_bounds = array<i64: 1>, scalar_prefetch = 0 : i64, scratch_operands = 0 : i64, tpu.core_type = #tpu.core_type<tc>, window_params = [{transform_indices = @transform_0, window_bounds = array<i64: 8, 768>}, {pipeline_mode = #tpu.pipeline_mode<synchronous>, transform_indices = @transform_1, window_bounds = array<i64: 768, 128>}, {pipeline_mode = #tpu.pipeline_mode<synchronous>, transform_indices = @transform_2, window_bounds = array<i64: 128, 128>}, {pipeline_mode = #tpu.pipeline_mode<synchronous>, transform_indices = @transform_3, window_bounds = array<i64: 128, 128>}, {pipeline_mode = #tpu.pipeline_mode<synchronous>, transform_indices = @transform_4, window_bounds = array<i64: 8, 128>}, {transform_indices = @transform_5, window_bounds = array<i64: 8, 128>}]} {
    %c0 = arith.constant 0 : index
    %c0_0 = arith.constant 0 : index
    %0 = vector.load %arg5[%c0, %c0_0] : memref<8x128xf32, #tpu.memory_space<vmem>>, vector<8x128xf32>
    %c0_1 = arith.constant 0 : index
    %c0_2 = arith.constant 0 : index
    %1 = vector.load %arg1[%c0_1, %c0_2] : memref<8x768xbf16, #tpu.memory_space<vmem>>, vector<8x768xbf16>
    %c0_3 = arith.constant 0 : index
    %c0_4 = arith.constant 0 : index
    %2 = vector.load %arg2[%c0_3, %c0_4] : memref<768x128xbf16, #tpu.memory_space<vmem>>, vector<768x128xbf16>
    %cst = arith.constant dense<0.000000e+00> : vector<8x128xf32>
    %3 = tpu.matmul %1, %2, %cst {dimension_numbers = #tpu.dot_dimension_numbers<[1], [0], [0], [1], [0, 0, 1, 1], [], []>} : vector<8x768xbf16>, vector<768x128xbf16>, vector<8x128xf32> -> vector<8x128xf32>
    %4 = vector.extract_strided_slice %0 {offsets = [0, 0], sizes = [1, 128], strides = [1, 1]} : vector<8x128xf32> to vector<1x128xf32>
    %5 = vector.broadcast %4 : vector<1x128xf32> to vector<8x128xf32>
    %6 = arith.addf %3, %5 : vector<8x128xf32>
    %cst_5 = arith.constant 0.000000e+00 : f32
    %7 = vector.broadcast %cst_5 : f32 to vector<8x128xf32>
    %8 = arith.maximumf %6, %7 : vector<8x128xf32>
    %9 = arith.truncf %8 : vector<8x128xf32> to vector<8x128xbf16>
    %c0_6 = arith.constant 0 : index
    %c0_7 = arith.constant 0 : index
    %10 = vector.load %arg3[%c0_6, %c0_7] : memref<128x128xbf16, #tpu.memory_space<vmem>>, vector<128x128xbf16>
    %cst_8 = arith.constant dense<0.000000e+00> : vector<8x128xf32>
    %11 = tpu.matmul %9, %10, %cst_8 {dimension_numbers = #tpu.dot_dimension_numbers<[1], [0], [0], [1], [0, 0, 1, 1], [], []>} : vector<8x128xbf16>, vector<128x128xbf16>, vector<8x128xf32> -> vector<8x128xf32>
    %12 = vector.extract_strided_slice %0 {offsets = [1, 0], sizes = [1, 128], strides = [1, 1]} : vector<8x128xf32> to vector<1x128xf32>
    %13 = vector.broadcast %12 : vector<1x128xf32> to vector<8x128xf32>
    %14 = arith.addf %11, %13 : vector<8x128xf32>
    %cst_9 = arith.constant 0.000000e+00 : f32
    %15 = vector.broadcast %cst_9 : f32 to vector<8x128xf32>
    %16 = arith.maximumf %14, %15 : vector<8x128xf32>
    %17 = arith.truncf %16 : vector<8x128xf32> to vector<8x128xbf16>
    %c0_10 = arith.constant 0 : index
    %c0_11 = arith.constant 0 : index
    %18 = vector.load %arg4[%c0_10, %c0_11] : memref<128x128xbf16, #tpu.memory_space<vmem>>, vector<128x128xbf16>
    %cst_12 = arith.constant dense<0.000000e+00> : vector<8x128xf32>
    %19 = tpu.matmul %17, %18, %cst_12 {dimension_numbers = #tpu.dot_dimension_numbers<[1], [0], [0], [1], [0, 0, 1, 1], [], []>} : vector<8x128xbf16>, vector<128x128xbf16>, vector<8x128xf32> -> vector<8x128xf32>
    %20 = vector.extract_strided_slice %0 {offsets = [2, 0], sizes = [1, 128], strides = [1, 1]} : vector<8x128xf32> to vector<1x128xf32>
    %21 = vector.broadcast %20 : vector<1x128xf32> to vector<8x128xf32>
    %22 = arith.addf %19, %21 : vector<8x128xf32>
    %c0_13 = arith.constant 0 : index
    %c0_14 = arith.constant 0 : index
    %23 = vector.load %arg6[%c0_13, %c0_14] : memref<8x128xf32, #tpu.memory_space<vmem>>, vector<8x128xf32>
    tpu.vector_store %arg6[%c0_13, %c0_14], %22 {strides = array<i32>} : memref<8x128xf32, #tpu.memory_space<vmem>>, vector<8x128xf32>,
    return
  }
  func.func @transform_0(%arg0: i32) -> (i32, i32) {
    %c0_i32 = arith.constant 0 : i32
    %c0_i32_0 = arith.constant 0 : i32
    return %arg0, %c0_i32 : i32, i32
  }
  func.func @transform_1(%arg0: i32) -> (i32, i32) {
    %c0_i32 = arith.constant 0 : i32
    %c0_i32_0 = arith.constant 0 : i32
    %c0_i32_1 = arith.constant 0 : i32
    return %c0_i32, %c0_i32_0 : i32, i32
  }
  func.func @transform_2(%arg0: i32) -> (i32, i32) {
    %c0_i32 = arith.constant 0 : i32
    %c0_i32_0 = arith.constant 0 : i32
    %c0_i32_1 = arith.constant 0 : i32
    return %c0_i32, %c0_i32_0 : i32, i32
  }
  func.func @transform_3(%arg0: i32) -> (i32, i32) {
    %c0_i32 = arith.constant 0 : i32
    %c0_i32_0 = arith.constant 0 : i32
    %c0_i32_1 = arith.constant 0 : i32
    return %c0_i32, %c0_i32_0 : i32, i32
  }
  func.func @transform_4(%arg0: i32) -> (i32, i32) {
    %c0_i32 = arith.constant 0 : i32
    %c0_i32_0 = arith.constant 0 : i32
    %c0_i32_1 = arith.constant 0 : i32
    return %c0_i32, %c0_i32_0 : i32, i32
  }
  func.func @transform_5(%arg0: i32) -> (i32, i32) {
    %c0_i32 = arith.constant 0 : i32
    %c0_i32_0 = arith.constant 0 : i32
    return %arg0, %c0_i32 : i32, i32
  }
}

</mosaic_0001>

<bundles_post_ra>
// kernel: tpu_custom_call.1
= control target key start
LH: loop header
LB: loop body
LE: loop exit
PB: predicated region body
PF: predicated region fallthrough
CT: control target
= control target key end

     0   :  { %10 = vsyncpa [#allocation3], 0  ;;  %s1299_s0 = inlined_call_operand.hbm [shape: bf16[8,768], index: 0, kind: input, shape index: {}]   ;;  %s1300_s1 = inlined_call_operand.hbm [shape: bf16[768,128], index: 1, kind: input, shape index: {}]   ;;  %s1301_s2 = inlined_call_operand.hbm [shape: bf16[128,128], index: 2, kind: input, shape index: {}]   ;;  %s1302_s3 = inlined_call_operand.hbm [shape: bf16[128,128], index: 3, kind: input, shape index: {}]   ;;  %s1303_s4 = inlined_call_operand.hbm [shape: f32[8,128], index: 4, kind: input, shape index: {}]   ;;  %s1304_s5 = inlined_call_operand.hbm [shape: f32[8,128], index: 5, kind: output, shape index: {}]  }
   0x1   :  { %11 = vsyncpa [#allocation6], 0 }
   0x2   :  { %12 = vsyncpa [#allocation9], 0  ;;  %s29_s20 = sshll.u32 %s1300_s1, 4  ;;  %s30_s20 = int_to_ptr.hbm [resolvable:$true] %s29_s20 }
   0x3   :  { %13 = vsyncpa [#allocation4], 0  ;;  %s1243_s21 = smov [#allocation5]   ;;  %s55_s25 = sshll.u32 %s1302_s3, 4  ;;  %s56_s25 = int_to_ptr.hbm [resolvable:$true] %s55_s25 }
   0x4   :  { %s31_s22 = sshll.u32 %s1243_s21, 4  ;;  %s1244_s26 = smov 64   ;;  %s32_s22 = int_to_ptr.vmem [resolvable:$true] %s31_s22 }
   0x5   :  { %s1245_s27 = smov 4   ;;  %s1246_s28 = smov [#allocation8]  }
   0x6   :  { %37 = dma.hbm_to_vmem [thread:$0]  %s30_s20, 6144, %s32_s22, [#allocation6], %s1244_s26, %s1244_s26, %s1245_s27  }
   0x7   :  { %s57_s29 = sshll.u32 %s1246_s28, 4  ;;  %s19_s7 = sshll.u32 %s1299_s0, 4  ;;  %s58_s29 = int_to_ptr.vmem [resolvable:$true] %s57_s29  ;;  %s20_s7 = int_to_ptr.hbm [resolvable:$true] %s19_s7 }
   0x8   :  { %63 = dma.hbm_to_vmem [thread:$0]  %s56_s25, 1024, %s58_s29, [#allocation9], %s1244_s26, %s1244_s26, %s1245_s27  }
   0x9   :  { %s42_s9 = sshll.u32 %s1301_s2, 4  ;;  %s1247_s10 = smov [#allocation2]   ;;  %s43_s9 = int_to_ptr.hbm [resolvable:$true] %s42_s9 }
   0xa   :  { %s21_s11 = sshll.u32 %s1247_s10, 4  ;;  %s1248_s3 = smov [#allocation7]   ;;  %s22_s11 = int_to_ptr.vmem [resolvable:$true] %s21_s11 }
   0xb   :  { %24 = dma.hbm_to_vmem [thread:$0]  %s20_s7, 384, %s22_s11, [#allocation3]  }
   0xc   :  { %s44_s12 = sshll.u32 %s1248_s3, 4  ;;  %s69_s15 = sshll.u32 %s1303_s4, 4  ;;  %s45_s12 = int_to_ptr.vmem [resolvable:$true] %s44_s12  ;;  %s70_s15 = int_to_ptr.hbm [resolvable:$true] %s69_s15 }
   0xd   :  { %50 = dma.hbm_to_vmem [thread:$0]  %s43_s9, 1024, %s45_s12, [#allocation6], %s1244_s26, %s1244_s26, %s1245_s27  }
   0xe   :  { %s1249_s0 = smov [#allocation10]  }
   0xf   :  { %s71_s16 = sshll.u32 %s1249_s0, 4  ;;  %s72_s16 = int_to_ptr.vmem [resolvable:$true] %s71_s16 }
  0x10   :  { %74 = dma.hbm_to_vmem [thread:$0]  %s70_s15, 128, %s72_s16, [#allocation9]  }
  0x11   :  { %1235 = dma.done.wait [#allocation3], 384  }
  0x12   :  { %1236 = vsyncadd [#allocation3], 4294966912 }
  0x13   :  { %1237 = dma.done.wait [#allocation6], 7168  }
  0x14   :  { %1238 = vsyncadd [#allocation6], 4294960128 }
  0x15   :  { %1239 = dma.done.wait [#allocation9], 1152  }
  0x16   :  { %1240 = vsyncadd [#allocation9], 4294966144  ;;  %v1026_v0 = vld [vmem:[#allocation5 + $0x38] sm:$0xff]  ;;  %v1025_v2 = vld [vmem:[#allocation5 + $0x30] sm:$0xff]  ;;  %s1250_s2 = smov [#allocation11]   ;;  %s751_s19 = sshll.u32 %s1304_s5, 4  ;;  %s752_s19 = int_to_ptr.hbm [resolvable:$true] %s751_s19 }
  0x17   :  { %v1034_v1 = vld [vmem:[#allocation5 + $0x78] sm:$0xff]  ;;  %505 = vmatpush.bf16.msra.mxu0 %v1026_v0  ;;  %v1033_v3 = vld [vmem:[#allocation5 + $0x70] sm:$0xff]  ;;  %v1024_v8 = vld [vmem:[#allocation5 + $0x28] sm:$0xff]  ;;  %s749_s4 = sshll.u32 %s1250_s2, 4  ;;  %s750_s4 = int_to_ptr.vmem [resolvable:$true] %s749_s4 }
  0x18   :  { %518 = vmatpush.bf16.msra.mxu1 %v1034_v1  ;;  %v1042_v4 = vld [vmem:[#allocation5 + $0xb8] sm:$0xff]  ;;  %v1041_v6 = vld [vmem:[#allocation5 + $0xb0] sm:$0xff]  ;;  %v1032_v9 = vld [vmem:[#allocation5 + $0x68] sm:$0xff] }
  0x19   :  { %v1050_v5 = vld [vmem:[#allocation5 + $0xf8] sm:$0xff]  ;;  %531 = vmatpush.bf16.msra.mxu2 %v1042_v4  ;;  %v1049_v7 = vld [vmem:[#allocation5 + $0xf0] sm:$0xff]  ;;  %v1040_v10 = vld [vmem:[#allocation5 + $0xa8] sm:$0xff] }
  0x1a   :  { %544 = vmatpush.bf16.msra.mxu3 %v1050_v5  ;;  %v1048_v11 = vld [vmem:[#allocation5 + $0xe8] sm:$0xff]  ;;  %v1023_v12 = vld [vmem:[#allocation5 + $0x20] sm:$0xff]  ;;  %v1022_v16 = vld [vmem:[#allocation5 + $0x18] sm:$0xff] }
  0x1b   :  { %506 = vmatpush.bf16.msra.mxu0 %v1025_v2  ;;  %v1031_v13 = vld [vmem:[#allocation5 + $0x60] sm:$0xff]  ;;  %v1030_v17 = vld [vmem:[#allocation5 + $0x58] sm:$0xff]  ;;  %v1021_v20 = vld [vmem:[#allocation5 + $0x10] sm:$0xff] }
  0x1c   :  { %519 = vmatpush.bf16.msra.mxu1 %v1033_v3  ;;  %v1039_v14 = vld [vmem:[#allocation5 + $0xa0] sm:$0xff]  ;;  %v1038_v18 = vld [vmem:[#allocation5 + $0x98] sm:$0xff]  ;;  %v1029_v21 = vld [vmem:[#allocation5 + $0x50] sm:$0xff] }
  0x1d   :  { %532 = vmatpush.bf16.msra.mxu2 %v1041_v6  ;;  %v1047_v15 = vld [vmem:[#allocation5 + $0xe0] sm:$0xff]  ;;  %v1046_v19 = vld [vmem:[#allocation5 + $0xd8] sm:$0xff]  ;;  %v1037_v22 = vld [vmem:[#allocation5 + $0x90] sm:$0xff] }
  0x1e   :  { %545 = vmatpush.bf16.msra.mxu3 %v1049_v7  ;;  %v1045_v23 = vld [vmem:[#allocation5 + $0xd0] sm:$0xff]  ;;  %v1020_v24 = vld [vmem:[#allocation5 + $0x8] sm:$0xff]  ;;  %v1019_v32 = vld [vmem:[#allocation5] sm:$0xff] }
  0x1f   :  { %507 = vmatpush.bf16.msra.mxu0 %v1024_v8  ;;  %v1028_v25 = vld [vmem:[#allocation5 + $0x48] sm:$0xff]  ;;  %v97_v31 = vld [vmem:[#allocation2 + $0x8] sm:$0xff]  ;;  %v1027_v33 = vld [vmem:[#allocation5 + $0x40] sm:$0xff] }
  0x20   :  { %520 = vmatpush.bf16.msra.mxu1 %v1032_v9  ;;  %v96_v26 = vld [vmem:[#allocation2] sm:$0xff]  ;;  %v1058_v34 = vld [vmem:[#allocation5 + $0x138] sm:$0xff]  ;;  %v1035_v36 = vld [vmem:[#allocation5 + $0x80] sm:$0xff]  ;;  %v201_v37 = vunpack.c.l.b16 %v97_v31  ;;  %v202_v40 = vunpack.c.h.b16 %v97_v31 }
  0x21   :  { %533 = vmatpush.bf16.msra.mxu2 %v1040_v10  ;;  %v1036_v27 = vld [vmem:[#allocation5 + $0x88] sm:$0xff]  ;;  %v199_v28 = vunpack.c.l.b16 %v96_v26  ;;  %v200_v30 = vunpack.c.h.b16 %v96_v26  ;;  %v1066_v35 = vld [vmem:[#allocation5 + $0x178] sm:$0xff]  ;;  %v1043_v41 = vld [vmem:[#allocation5 + $0xc0] sm:$0xff] }
  0x22   :  { %546 = vmatpush.bf16.msra.mxu3 %v1048_v11  ;;  %v1044_v29 = vld [vmem:[#allocation5 + $0xc8] sm:$0xff]  ;;  %v1057_v42 = vld [vmem:[#allocation5 + $0x130] sm:$0xff]  ;;  %v207_v44 = vpack.c.b16 %v201_v37, %v201_v37  ;;  %v208_v45 = vpack.c.b16 %v202_v40, %v202_v40  ;;  %v1055_v48 = vld [vmem:[#allocation5 + $0x120] sm:$0xff] }
  0x23   :  { %508 = vmatpush.bf16.msra.mxu0 %v1023_v12  ;;  %v205_v38 = vpack.c.b16 %v199_v28, %v199_v28  ;;  %v206_v39 = vpack.c.b16 %v200_v30, %v200_v30  ;;  %v1065_v43 = vld [vmem:[#allocation5 + $0x170] sm:$0xff]  ;;  %v1056_v46 = vld [vmem:[#allocation5 + $0x128] sm:$0xff]  ;;  %v1063_v49 = vld [vmem:[#allocation5 + $0x160] sm:$0xff] }
  0x24   :  { %521 = vmatpush.bf16.msra.mxu1 %v1031_v13  ;;  %v1064_v47 = vld [vmem:[#allocation5 + $0x168] sm:$0xff]  ;;  %v1054_v50 = vld [vmem:[#allocation5 + $0x118] sm:$0xff]  ;;  %v1053_v52 = vld [vmem:[#allocation5 + $0x110] sm:$0xff] }
  0x25   :  { %534 = vmatpush.bf16.msra.mxu2 %v1039_v14  ;;  %v1062_v51 = vld [vmem:[#allocation5 + $0x158] sm:$0xff]  ;;  %v1061_v53 = vld [vmem:[#allocation5 + $0x150] sm:$0xff]  ;;  %v1052_v54 = vld [vmem:[#allocation5 + $0x108] sm:$0xff] }
  0x26   :  { %547 = vmatpush.bf16.msra.mxu3 %v1047_v15  ;;  %v1060_v55 = vld [vmem:[#allocation5 + $0x148] sm:$0xff]  ;;  %v98_v56 = vld [vmem:[#allocation2 + $0x10] sm:$0xff]  ;;  %v1051_v59 = vld [vmem:[#allocation5 + $0x100] sm:$0xff] }
  0x27   :  { %509 = vmatpush.bf16.msra.mxu0 %v1022_v16  ;;  %v203_v57 = vunpack.c.l.b16 %v98_v56  ;;  %v204_v58 = vunpack.c.h.b16 %v98_v56  ;;  %v1059_v60 = vld [vmem:[#allocation5 + $0x140] sm:$0xff]  ;;  %v1074_v63 = vld [vmem:[#allocation7 + $0x38] sm:$0xff]  ;;  %v1073_v0 = vld [vmem:[#allocation7 + $0x30] sm:$0xff] }
  0x28   :  { %522 = vmatpush.bf16.msra.mxu1 %v1030_v17  ;;  %v1072_v1 = vld [vmem:[#allocation7 + $0x28] sm:$0xff]  ;;  %v1071_v2 = vld [vmem:[#allocation7 + $0x20] sm:$0xff]  ;;  %v1070_v3 = vld [vmem:[#allocation7 + $0x18] sm:$0xff] }
  0x29   :  { %535 = vmatpush.bf16.msra.mxu2 %v1038_v18  ;;  %v209_v61 = vpack.c.b16 %v203_v57, %v203_v57  ;;  %v210_v62 = vpack.c.b16 %v204_v58, %v204_v58  ;;  %v1069_v4 = vld [vmem:[#allocation7 + $0x10] sm:$0xff]  ;;  %v1068_v5 = vld [vmem:[#allocation7 + $0x8] sm:$0xff]  ;;  %v1067_v8 = vld [vmem:[#allocation7] sm:$0xff] }
  0x2a   :  { %548 = vmatpush.bf16.msra.mxu3 %v1046_v19  ;;  %v1082_v9 = vld [vmem:[#allocation8 + $0x38] sm:$0xff]  ;;  %v1081_v12 = vld [vmem:[#allocation8 + $0x30] sm:$0xff]  ;;  %v95_v13 = vld [vmem:[#allocation10] sm:$0xff] }
  0x2b   :  { %510 = vmatpush.bf16.msra.mxu0 %v1021_v20  ;;  %v195_v16 = vperm.slane %v95_v13, 0  ;;  %v1080_v17 = vld [vmem:[#allocation8 + $0x28] sm:$0xff]  ;;  %v1079_v19 = vld [vmem:[#allocation8 + $0x20] sm:$0xff]  ;;  %v601_v37 = vperm.slane %v95_v13, 1 }
  0x2c   :  { %523 = vmatpush.bf16.msra.mxu1 %v1029_v21 }
  0x2d   :  { %536 = vmatpush.bf16.msra.mxu2 %v1037_v22 }
  0x2e   :  { %549 = vmatpush.bf16.msra.mxu3 %v1045_v23  ;;  %v1078_v23 = vld [vmem:[#allocation8 + $0x18] sm:$0xff] }
  0x2f   :  { %511 = vmatpush.bf16.msra.mxu0 %v1020_v24 }
  0x30   :  { %524 = vmatpush.bf16.msra.mxu1 %v1028_v25  ;;  %v1077_v25 = vld [vmem:[#allocation8 + $0x10] sm:$0xff] }
  0x31   :  { %537 = vmatpush.bf16.msra.mxu2 %v1036_v27 }
  0x32   :  { %550 = vmatpush.bf16.msra.mxu3 %v1044_v29 }
  0x33   :  { %512 = vmatpush.bf16.msra.mxu0 %v1019_v32 }
  0x34   :  { %525 = vmatpush.bf16.msra.mxu1 %v1027_v33 }
  0x35   :  { %538 = vmatpush.bf16.msra.mxu2 %v1035_v36  ;;  %v1075_v36 = vld [vmem:[#allocation8] sm:$0xff] }
  0x36   :  { %513 = vmatmul.bf16.vlgmr.msra.gmra.mxu0 %v205_v38  ;;  %551 = vmatpush.bf16.msra.mxu3 %v1043_v41 }
  0x37   :  { %557 = vmatpush.bf16.msrb.mxu0 %v1058_v34  ;;  %526 = vmatmul.bf16.vlgmr.msra.gmra.mxu1 %v206_v39 }
  0x38   :  { %570 = vmatpush.bf16.msrb.mxu1 %v1066_v35  ;;  %539 = vmatmul.bf16.vlgmr.msra.gmra.mxu2 %v207_v44  ;;  %v1076_v35 = vld [vmem:[#allocation8 + $0x8] sm:$0xff] }
  0x39   :  { %552 = vmatmul.bf16.vlgmr.msra.gmra.mxu3 %v208_v45  ;;  %650 = vmatpush.bf16.msrb.mxu2 %v1074_v63 }
  0x3a   :  { %730 = vmatpush.bf16.msrb.mxu3 %v1082_v9 }
  0x3b   :  { %558 = vmatpush.bf16.msrb.mxu0 %v1057_v42 }
  0x3c   :  { %571 = vmatpush.bf16.msrb.mxu1 %v1065_v43  ;;  %v681_v43 = vperm.slane %v95_v13, 2 }
  0x3d   :  { %651 = vmatpush.bf16.msrb.mxu2 %v1073_v0 }
  0x3e   :  { %731 = vmatpush.bf16.msrb.mxu3 %v1081_v12 }
  0x3f   :  { %559 = vmatpush.bf16.msrb.mxu0 %v1056_v46 }
  0x40   :  { %572 = vmatpush.bf16.msrb.mxu1 %v1064_v47 }
  0x41   :  { %652 = vmatpush.bf16.msrb.mxu2 %v1072_v1 }
  0x42   :  { %732 = vmatpush.bf16.msrb.mxu3 %v1080_v17 }
  0x43   :  { %560 = vmatpush.bf16.msrb.mxu0 %v1055_v48 }
  0x44   :  { %573 = vmatpush.bf16.msrb.mxu1 %v1063_v49 }
  0x45   :  { %653 = vmatpush.bf16.msrb.mxu2 %v1071_v2 }
  0x46   :  { %733 = vmatpush.bf16.msrb.mxu3 %v1079_v19 }
  0x47   :  { %561 = vmatpush.bf16.msrb.mxu0 %v1054_v50 }
  0x48   :  { %574 = vmatpush.bf16.msrb.mxu1 %v1062_v51 }
  0x49   :  { %654 = vmatpush.bf16.msrb.mxu2 %v1070_v3 }
  0x4a   :  { %734 = vmatpush.bf16.msrb.mxu3 %v1078_v23 }
  0x4b   :  { %562 = vmatpush.bf16.msrb.mxu0 %v1053_v52 }
  0x4c   :  { %575 = vmatpush.bf16.msrb.mxu1 %v1061_v53 }
  0x4d   :  { %655 = vmatpush.bf16.msrb.mxu2 %v1069_v4 }
  0x4e   :  { %735 = vmatpush.bf16.msrb.mxu3 %v1077_v25 }
  0x4f   :  { %563 = vmatpush.bf16.msrb.mxu0 %v1052_v54 }
  0x50   :  { %576 = vmatpush.bf16.msrb.mxu1 %v1060_v55 }
  0x51   :  { %656 = vmatpush.bf16.msrb.mxu2 %v1068_v5 }
  0x52   :  { %736 = vmatpush.bf16.msrb.mxu3 %v1076_v35 }
  0x53   :  { %564 = vmatpush.bf16.msrb.mxu0 %v1051_v59 }
  0x54   :  { %577 = vmatpush.bf16.msrb.mxu1 %v1059_v60 }
  0x55   :  { %657 = vmatpush.bf16.msrb.mxu2 %v1067_v8 }
  0x56   :  { %565 = vmatmul.bf16.vlgmr.msrb.gmra.mxu0 %v209_v61  ;;  %737 = vmatpush.bf16.msrb.mxu3 %v1075_v36 }
  0x57   :  { %578 = vmatmul.bf16.vlgmr.msrb.gmra.mxu1 %v210_v62 }
  0xb3   :  { %v514_v6 = vpop.f32.mrf.mxu0 }
  0xb4   :  { %v527_v7 = vpop.f32.mrf.mxu1  ;;  %v515_v18 = vadd.f32 %v514_v6, %v195_v16 }
  0xb6   :  { %v528_v22 = vadd.f32 %v527_v7, %v515_v18 }
  0xbb   :  { %v516_v10 = vpop.f32.mrf.mxu0  ;;  %v540_v14 = vpop.f32.mrf.mxu2 }
  0xbc   :  { %v529_v11 = vpop.f32.mrf.mxu1  ;;  %v553_v15 = vpop.f32.mrf.mxu3  ;;  %v541_v24 = vadd.f32 %v540_v14, %v528_v22 }
  0xbe   :  { %v554_v26 = vadd.f32 %v553_v15, %v541_v24 }
  0xc3   :  { %v542_v20 = vpop.f32.mrf.mxu2 }
  0xc4   :  { %v555_v21 = vpop.f32.mrf.mxu3 }
  0xd3   :  { %v566_v27 = vpop.f32.mrf.mxu0 }
  0xd4   :  { %v579_v28 = vpop.f32.mrf.mxu1  ;;  %v567_v29 = vadd.f32 %v566_v27, %v554_v26 }
  0xd6   :  { %v580_v30 = vadd.f32 %v579_v28, %v567_v29 }
  0xd8   :  { %v583_v31 = vmax.f32 %v580_v30, 0.0 }
  0xda   :  { %v584_v32 = vpack.c.bf16 %v583_v31, %v583_v31 }
  0xdb   :  { %v568_v33 = vpop.f32.mrf.mxu0 }
  0xdc   :  { %v581_v34 = vpop.f32.mrf.mxu1  ;;  %658 = vmatmul.bf16.vlgmr.msrb.gmra.mxu2 %v584_v32 }
 0x15f   :  { %v659_v38 = vpop.f32.mrf.mxu2 }
 0x160   :  { %v660_v39 = vadd.f32 %v659_v38, %v601_v37 }
 0x162   :  { %v663_v40 = vmax.f32 %v660_v39, 0.0 }
 0x164   :  { %v664_v41 = vpack.c.bf16 %v663_v40, %v663_v40 }
 0x166   :  { %738 = vmatmul.bf16.vlgmr.msrb.gmra.mxu3 %v664_v41 }
 0x167   :  { %v661_v42 = vpop.f32.mrf.mxu2 }
 0x1e9   :  { %v739_v44 = vpop.f32.mrf.mxu3 }
 0x1ea   :  { %v740_v45 = vadd.f32 %v739_v44, %v681_v43 }
 0x1ec   :  { %743 = vst [vmem:[#allocation11] sm:$0xff] %v740_v45 }
 0x1ed   :  { %754 = dma.vmem_to_hbm [thread:$0]  %s750_s4, 128, %s752_s19, [#allocation4]  }
 0x1f1   :  { %v741_v46 = vpop.f32.mrf.mxu3 }
 0x1f2   :  { %1241 = dma.done.wait [#allocation4], 128  }
 0x1f3   :  { %1242 = vsyncadd [#allocation4], 4294967168 }
 0x1f4   :  { %759 = vsyncpa [#allocation3], 1 }
 0x1f5   :  { %760 = vsyncpa [#allocation6], 1 }
 0x1f6   :  { %761 = vsyncpa [#allocation9], 1 }
 0x1f7   :  { %762 = vsyncpa [#allocation4], 1 }

</bundles_post_ra>
